<compile_context>
chip_gen: v5e
topology: v5e:2x2
jax: 0.10.0
libtpu: 0.0.40
codegen_flags: <defaults>
</compile_context>

<pallas_src>
from functools import lru_cache

import numpy as np
import jax
import jax.numpy as jnp
from jax.experimental import pallas as pl
from jax.experimental.pallas import tpu as pltpu

_LANE = 128
_NO_GRID_MAX_B = 128   # below this, a single VMEM-resident block (no grid)


def _round_up(x: int, m: int) -> int:
    return (x + m - 1) // m * m


def _poly_basis(degree: int, size: int) -> np.ndarray:
    # torch.stack([torch.linspace(0, 1, steps=size) ** i for i in range(degree + 1)], dim=0)
    t = np.linspace(0.0, 1.0, num=size, dtype=np.float32)
    return np.stack([t ** i for i in range(degree + 1)], axis=0).astype(np.float32)


@lru_cache(maxsize=None)
def _fused_basis_and_kernel(degree: int, backcast_size: int, forecast_size: int):
    """Build (once per config) the lane-aligned block-diagonal basis and its kernel."""
    cut = degree + 1
    fsz_pad = max(_LANE, _round_up(forecast_size, _LANE))

    # Block-diagonal, lane-aligned fused basis (f32 regardless of theta dtype):
    #   rows [:cut]  x cols [0:fsz]            -> forecast basis (pairs theta[:, :cut])
    #   rows [cut:]  x cols [fsz_pad:fsz_pad+bsz] -> backcast basis (pairs theta[:, cut:])
    fused_np = np.zeros((2 * cut, fsz_pad + backcast_size), dtype=np.float32)
    fused_np[:cut, :forecast_size] = _poly_basis(degree, forecast_size)
    fused_np[cut:, fsz_pad:] = _poly_basis(degree, backcast_size)
    fused = jnp.asarray(fused_np)

    def kernel(theta_ref, basis_ref, back_ref, fore_ref):
        # Single MXU matmul with f32 accumulation:
        #   (TB, 2*cut) @ (2*cut, fsz_pad + bsz) -> (TB, fsz_pad + bsz)
        full = jnp.dot(theta_ref[...], basis_ref[...],
                       preferred_element_type=jnp.float32)
        # Both slice starts (0 and fsz_pad) are 128-lane aligned -> plain stores.
        fore_ref[...] = full[:, :forecast_size].astype(fore_ref.dtype)
        back_ref[...] = full[:, fsz_pad:fsz_pad + backcast_size].astype(back_ref.dtype)

    return fused, kernel, fsz_pad


def make_trend_basis_forward(degree: int, backcast_size: int, forecast_size: int,
                             *, block_b: int = 2048):
    """Returns forward(theta) -> (backcast (B, bsz), forecast (B, fsz))."""
    assert block_b % 8 == 0
    cut = degree + 1
    two_cut = 2 * cut
    fused, kernel, fsz_pad = _fused_basis_and_kernel(degree, backcast_size, forecast_size)
    t_total = fsz_pad + backcast_size

    def forward(theta: jnp.ndarray):
        B, tc = theta.shape
        assert tc == two_cut, f"theta last dim {tc} != 2*(degree+1) = {two_cut}"
        out_shapes = (
            jax.ShapeDtypeStruct((B, backcast_size), theta.dtype),   # backcast
            jax.ShapeDtypeStruct((B, forecast_size), theta.dtype),   # forecast
        )

        if B <= _NO_GRID_MAX_B:
            # Whole problem is one VMEM-resident block; no grid / pipelining machinery.
            # TODO(synk): for B <= ~64 a plain XLA dot (no Pallas custom-call boundary)
            # may be faster since it fuses with surrounding ops.
            return pl.pallas_call(
                kernel,
                out_shape=out_shapes,
                in_specs=[
                    pl.BlockSpec(memory_space=pltpu.MemorySpace.VMEM),
                    pl.BlockSpec(memory_space=pltpu.MemorySpace.VMEM),
                ],
                out_specs=(
                    pl.BlockSpec(memory_space=pltpu.MemorySpace.VMEM),
                    pl.BlockSpec(memory_space=pltpu.MemorySpace.VMEM),
                ),
            )(theta, fused)

        # Mid-size batches: 2-step grid so both v7x TensorCores get work.
        # Large batches: fat block_b-row tiles (fewer grid steps -> less fixed
        # per-step overhead; the kernel is HBM/overhead bound, not MXU bound).
        if B <= block_b:
            tile_b = max(8, _round_up(pl.cdiv(B, 2), 8))
        else:
            tile_b = block_b
        grid = (pl.cdiv(B, tile_b),)

        # Lane-padding-aware VMEM estimate (each tile is padded to >=128 lanes,
        # double-buffered). Only raise the scoped limit if we would exceed the
        # v5e default (16 MiB) with headroom.
        tiled_widths = (two_cut, backcast_size, forecast_size)
        vmem_est = sum(2 * tile_b * _round_up(w, _LANE) * 4 for w in tiled_widths)
        vmem_est += 2 * _round_up(two_cut, 8) * _round_up(t_total, _LANE) * 4  # fused basis
        vmem_limit = (vmem_est + (4 << 20)) if vmem_est > (12 << 20) else None

        return pl.pallas_call(
            kernel,
            out_shape=out_shapes,
            grid=grid,
            in_specs=[
                pl.BlockSpec((tile_b, two_cut), lambda i: (i, 0)),
                # Constant index_map -> the tiny fused basis is DMA'd once and reused.
                pl.BlockSpec((two_cut, t_total), lambda i: (0, 0)),
            ],
            out_specs=(
                pl.BlockSpec((tile_b, backcast_size), lambda i: (i, 0)),
                pl.BlockSpec((tile_b, forecast_size), lambda i: (i, 0)),
            ),
            compiler_params=pltpu.CompilerParams(
                dimension_semantics=("parallel",),   # shards batch across v7x's 2 TCs
                vmem_limit_bytes=vmem_limit,
            ),
        )(theta, fused)

    return forward


if __name__ == "__main__":
    # Small, deterministic config consistent with the module.
    degree = 3
    backcast_size = 16
    forecast_size = 8
    cut = degree + 1

    back_basis = jnp.asarray(_poly_basis(degree, backcast_size))   # (cut, bsz)
    fore_basis = jnp.asarray(_poly_basis(degree, forecast_size))   # (cut, fsz)
    forward = make_trend_basis_forward(degree, backcast_size, forecast_size)

    def ref(theta):
        return (jnp.einsum('bp,pt->bt', theta[:, cut:], back_basis),
                jnp.einsum('bp,pt->bt', theta[:, :cut], fore_basis))

    key = jax.random.PRNGKey(0)
    # B=2     : no-grid (single VMEM block) path
    # B=1000  : ragged 2-step "parallel" grid (mid-size path)
    # B=4100  : fat-tile (block_b=2048) grid with a partial last block
    for i, B in enumerate((2, 1000, 4100)):
        theta = jax.random.normal(jax.random.fold_in(key, i), (B, 2 * cut),
                                  dtype=jnp.float32)
        backcast, forecast = forward(theta)
        jax.block_until_ready((backcast, forecast))
        ref_back, ref_fore = ref(theta)
        np.testing.assert_allclose(np.asarray(backcast), np.asarray(ref_back),
                                   rtol=1e-5, atol=1e-5)
        np.testing.assert_allclose(np.asarray(forecast), np.asarray(ref_fore),
                                   rtol=1e-5, atol=1e-5)

    print("KERNEL_OK")
</pallas_src>

<mosaic_0001>
module attributes {stable_mosaic.version = 11 : i64} {
  func.func @kernel(%arg0: memref<2x8xf32, #tpu.memory_space<vmem>>, %arg1: memref<8x144xf32, #tpu.memory_space<vmem>>, %arg2: memref<2x16xf32, #tpu.memory_space<vmem>>, %arg3: memref<2x8xf32, #tpu.memory_space<vmem>>) attributes {dimension_semantics = [], scalar_prefetch = 0 : i64, scratch_operands = 0 : i64, tpu.core_type = #tpu.core_type<tc>} {
    %c0 = arith.constant 0 : index
    %c0_0 = arith.constant 0 : index
    %0 = vector.load %arg0[%c0, %c0_0] : memref<2x8xf32, #tpu.memory_space<vmem>>, vector<2x8xf32>
    %c0_1 = arith.constant 0 : index
    %c0_2 = arith.constant 0 : index
    %1 = vector.load %arg1[%c0_1, %c0_2] : memref<8x144xf32, #tpu.memory_space<vmem>>, vector<8x144xf32>
    %cst = arith.constant dense<0.000000e+00> : vector<2x144xf32>
    %2 = tpu.matmul %0, %1, %cst {dimension_numbers = #tpu.dot_dimension_numbers<[1], [0], [0], [1], [0, 0, 1, 1], [], []>} : vector<2x8xf32>, vector<8x144xf32>, vector<2x144xf32> -> vector<2x144xf32>
    %3 = vector.extract_strided_slice %2 {offsets = [0, 0], sizes = [2, 8], strides = [1, 1]} : vector<2x144xf32> to vector<2x8xf32>
    %c0_3 = arith.constant 0 : index
    %c0_4 = arith.constant 0 : index
    %4 = vector.load %arg3[%c0_3, %c0_4] : memref<2x8xf32, #tpu.memory_space<vmem>>, vector<2x8xf32>
    tpu.vector_store %arg3[%c0_3, %c0_4], %3 {strides = array<i32>} : memref<2x8xf32, #tpu.memory_space<vmem>>, vector<2x8xf32>,
    %5 = vector.extract_strided_slice %2 {offsets = [0, 128], sizes = [2, 16], strides = [1, 1]} : vector<2x144xf32> to vector<2x16xf32>
    %c0_5 = arith.constant 0 : index
    %c0_6 = arith.constant 0 : index
    %6 = vector.load %arg2[%c0_5, %c0_6] : memref<2x16xf32, #tpu.memory_space<vmem>>, vector<2x16xf32>
    tpu.vector_store %arg2[%c0_5, %c0_6], %5 {strides = array<i32>} : memref<2x16xf32, #tpu.memory_space<vmem>>, vector<2x16xf32>,
    return
  }
}

</mosaic_0001>

<bundles_post_ra>
// kernel: tpu_custom_call.1
= control target key start
LH: loop header
LB: loop body
LE: loop exit
PB: predicated region body
PF: predicated region fallthrough
CT: control target
= control target key end

     0   :  { %9 = vsyncpa [#allocation3], 0  ;;  %s274_s0 = inlined_call_operand.hbm [shape: f32[2,8], index: 0, kind: input, shape index: {}]   ;;  %s275_s1 = inlined_call_operand.hbm [shape: f32[8,144], index: 1, kind: input, shape index: {}]   ;;  %s276_s2 = inlined_call_operand.hbm [shape: f32[2,16], index: 2, kind: output, shape index: {0}]   ;;  %s277_s3 = inlined_call_operand.hbm [shape: f32[2,8], index: 3, kind: output, shape index: {1}]  }
   0x1   :  { %10 = vsyncpa [#allocation6], 0 }
   0x2   :  { %11 = vsyncpa [#allocation4], 0 }
   0x3   :  { %12 = vsyncpa [#allocation9], 0  ;;  %s18_s14 = sshll.u32 %s274_s0, 4  ;;  %s238_s15 = smov [#allocation2]   ;;  %s19_s14 = int_to_ptr.hbm [resolvable:$true] %s18_s14 }
   0x4   :  { %s20_s16 = sshll.u32 %s238_s15, 4  ;;  %s29_s19 = sshll.u32 %s275_s1, 4  ;;  %s21_s16 = int_to_ptr.vmem [resolvable:$true] %s20_s16  ;;  %s30_s19 = int_to_ptr.hbm [resolvable:$true] %s29_s19 }
   0x5   :  { %23 = dma.hbm_to_vmem [thread:$0]  %s19_s14, 32, %s21_s16, [#allocation3]  }
   0x6   :  { %s239_s20 = smov [#allocation5]  }
   0x7   :  { %s31_s21 = sshll.u32 %s239_s20, 4  ;;  %s32_s21 = int_to_ptr.vmem [resolvable:$true] %s31_s21 }
   0x8   :  { %34 = dma.hbm_to_vmem [thread:$0]  %s30_s19, 256, %s32_s21, [#allocation6]  }
   0x9   :  { %230 = dma.done.wait [#allocation3], 32  }
   0xa   :  { %231 = vsyncadd [#allocation3], 4294967264 }
   0xb   :  { %232 = dma.done.wait [#allocation6], 256  }
   0xc   :  { %233 = vsyncadd [#allocation6], 4294967040  ;;  %vm46_vm0 = vcmask 64512   ;;  %v44_v0 = vld [vmem:[#allocation5] sm:$0xff]  ;;  %v45_v1 = vld [vmem:[#allocation5 + $0x8] sm:$0xff]  ;;  %s240_s0 = smov [#allocation8]  }
   0xd   :  { %v43_v2 = vld [vmem:[#allocation2] sm:$0x3]  ;;  %65 = vmatpush.msra.mxu0 %v44_v0  ;;  %85 = vmatpush.msra.mxu1 %v45_v1  ;;  %s110_s1 = sshll.u32 %s240_s0, 4  ;;  %s112_s24 = sshll.u32 %s277_s3, 4  ;;  %vm90_vm1 = vcmask 58368   ;;  %vm92_vm2 = vcmask 123904   ;;  %s111_s1 = int_to_ptr.vmem [resolvable:$true] %s110_s1  ;;  %s113_s24 = int_to_ptr.hbm [resolvable:$true] %s112_s24 }
   0xe   :  { %128 = vmatmul.msk.f32.vlgmr.msra.gmra.mxu0 %vm46_vm0, %v43_v2  ;;  %129 = vmatmul.msk.f32.vlgmr.msra.gmra.mxu1 %vm46_vm0, %v43_v2  ;;  %s241_s25 = smov [#allocation7]   ;;  %s101_s29 = sshll.u32 %s276_s2, 4  ;;  %s102_s29 = int_to_ptr.hbm [resolvable:$true] %s101_s29 }
   0xf   :  { %s99_s26 = sshll.u32 %s241_s25, 4  ;;  %s100_s26 = int_to_ptr.vmem [resolvable:$true] %s99_s26 }
  0x8b   :  { %v67_v3 = vpop.f32.mrf.mxu0  ;;  %v87_v4 = vpop.f32.mrf.mxu1 }
  0x8c   :  { %91 = vst.msk [vmem:[#allocation8] sm:$0x3] %vm90_vm1, %v67_v3 }
  0x8d   :  { %93 = vst.msk [vmem:[#allocation7] sm:$0x3] %vm92_vm2, %v87_v4  ;;  %115 = dma.vmem_to_hbm [thread:$0]  %s111_s1, 32, %s113_s24, [#allocation9]  }
  0x8e   :  { %104 = dma.vmem_to_hbm [thread:$0]  %s100_s26, 32, %s102_s29, [#allocation4]  }
  0x8f   :  { %234 = dma.done.wait [#allocation4], 32  }
  0x90   :  { %235 = vsyncadd [#allocation4], 4294967264 }
  0x91   :  { %236 = dma.done.wait [#allocation9], 32  }
  0x92   :  { %237 = vsyncadd [#allocation9], 4294967264 }
  0x93   :  { %124 = vsyncpa [#allocation3], 1 }
  0x94   :  { %125 = vsyncpa [#allocation6], 1 }
  0x95   :  { %126 = vsyncpa [#allocation4], 1 }
  0x96   :  { %127 = vsyncpa [#allocation9], 1 }

</bundles_post_ra>
